<compile_context>
chip_gen: v5e
topology: v5e:2x2
jax: 0.10.0
libtpu: 0.0.40
codegen_flags: <defaults>
</compile_context>

<pallas_src>
import math

import jax
import jax.numpy as jnp
from jax import lax
from jax.experimental import pallas as pl
from jax.experimental.pallas import tpu as pltpu


def _make_mha_kernel(n_head: int, project: bool):
    """Builds a kernel computing all heads of one batch element per grid step."""

    def kernel(*refs):
        if project:
            x_ref, w_ref, o_ref = refs          # x: (1,E,T)  w: (3E,E)  o: (1,T,E)
        else:
            x_ref, o_ref = refs                 # x: (1,E,T)  o: (1,T,E)

        E, T = x_ref.shape[1], x_ref.shape[2]
        hd = E // n_head
        scale = 1.0 / math.sqrt(hd)

        x = x_ref[0].astype(jnp.float32)        # (E, T)  == xt.T, never transposed

        if project:
            w = w_ref[...].astype(jnp.float32)  # (3E, E)
            # qkv = x.permute(0,2,1) @ W^T, expressed as a contraction over E of
            # x (dim 0) with W (dim 1) -> (T, 3E). No explicit transpose.
            qkv = lax.dot_general(
                x, w, (((0,), (1,)), ((), ())),
                preferred_element_type=jnp.float32)

        outs = []
        for h in range(n_head):                 # n_head is tiny & static: unrolled
            if project:
                q = qkv[:, h * hd:(h + 1) * hd] * scale          # (T, hd)
                k = qkv[:, E + h * hd:E + (h + 1) * hd]          # (T, hd)
                v = qkv[:, 2 * E + h * hd:2 * E + (h + 1) * hd]  # (T, hd)
                # s[q,k] = sum_d q[q,d] * k[k,d]  (contract last dims, no k.T)
                s = lax.dot_general(q, k, (((1,), (1,)), ((), ())),
                                    preferred_element_type=jnp.float32)  # (T,T)
            else:
                # q = k = v = xt[:, h*hd:(h+1)*hd]; keep the (hd, T) layout and
                # pick contraction dims so no transpose is ever materialized.
                xh = x[h * hd:(h + 1) * hd, :]                    # (hd, T)
                qh = xh * scale
                # s[q,k] = sum_d qh[d,q] * xh[d,k]
                s = lax.dot_general(qh, xh, (((0,), (0,)), ((), ())),
                                    preferred_element_type=jnp.float32)  # (T,T)

            # Numerically-stable softmax over the key axis.
            m = jnp.max(s, axis=-1, keepdims=True)
            p = jnp.exp(s - m)
            l = jnp.sum(p, axis=-1, keepdims=True)

            if project:
                acc = jnp.dot(p, v, preferred_element_type=jnp.float32)   # (T,hd)
            else:
                # o[q,d] = sum_k p[q,k] * xh[d,k]
                acc = lax.dot_general(p, x[h * hd:(h + 1) * hd, :],
                                      (((1,), (1,)), ((), ())),
                                      preferred_element_type=jnp.float32)  # (T,hd)

            # Divide on the (otherwise idle) EUP slot.
            outs.append(acc * pl.reciprocal(l, approx=True))

        # One lane-dense (T, E) store: heads concatenated along the last dim.
        o_ref[0] = jnp.concatenate(outs, axis=-1).astype(o_ref.dtype)

    return kernel


def multi_head_attention(x, c_attn_w=None, *, n_head=2, project=False):
    """x: (B, E, T) float32 (channels-first, as the PyTorch module receives it).

    Returns (B, E, T), matching MultiHeadAttention.forward (non-flash branch).
    """
    B, E, T = x.shape
    assert E % n_head == 0
    hd = E // n_head

    kernel = _make_mha_kernel(n_head, project)

    in_specs = [pl.BlockSpec((1, E, T), lambda b: (b, 0, 0))]
    args = [x]
    if project:
        assert c_attn_w is not None and c_attn_w.shape == (3 * E, E)
        in_specs.append(pl.BlockSpec((3 * E, E), lambda b: (0, 0)))
        args.append(c_attn_w)

    # Advisory cost estimate so XLA can overlap this tiny call with neighbors.
    flops = B * n_head * 4 * T * T * hd
    if project:
        flops += B * 2 * T * E * (3 * E)
    bytes_accessed = 4 * (B * E * T + B * T * E + (3 * E * E if project else 0))

    out_bte = pl.pallas_call(
        kernel,
        out_shape=jax.ShapeDtypeStruct((B, T, E), x.dtype),
        grid=(B,),
        in_specs=in_specs,
        out_specs=pl.BlockSpec((1, T, E), lambda b: (b, 0, 0)),
        compiler_params=pltpu.CompilerParams(
            dimension_semantics=("parallel",)),
        cost_estimate=pl.CostEstimate(
            flops=flops,
            transcendentals=B * n_head * T * T,
            bytes_accessed=bytes_accessed),
    )(*args)                                     # (B, T, E)

    # PyTorch: out.transpose(1,2).contiguous().view(B, E, T) is a RAW reshape
    # of the contiguous (B, T, nh*hd) buffer — reproduce it with a free reshape.
    return out_bte.reshape(B, E, T)


def _reference(x, c_attn_w=None, *, n_head=2, project=False):
    """Plain-JAX reference mirroring the PyTorch math (non-flash branch)."""
    B, E, T = x.shape
    hd = E // n_head
    xt = jnp.transpose(x, (0, 2, 1))             # (B, T, E)
    if project:
        qkv = xt @ c_attn_w.T
        q, k, v = jnp.split(qkv, 3, axis=-1)
    else:
        q = k = v = xt

    def to_heads(a):
        return jnp.transpose(a.reshape(B, T, n_head, hd), (0, 2, 1, 3))

    q, k, v = to_heads(q), to_heads(k), to_heads(v)
    att = jnp.einsum("bhqd,bhkd->bhqk", q, k) * (1.0 / math.sqrt(hd))
    att = jax.nn.softmax(att, axis=-1)
    o = jnp.einsum("bhqk,bhkd->bhqd", att, v)
    return jnp.transpose(o, (0, 2, 1, 3)).reshape(B, E, T)


if __name__ == "__main__":
    key = jax.random.PRNGKey(0)
    kx, kw = jax.random.split(key)

    B, dimension, T, n_head = 2, 32, 16, 2      # module: MultiHeadAttention(32, n_head=2)
    x = jax.random.normal(kx, (B, dimension, T), dtype=jnp.float32)

    # Deterministic init of c_attn (nn.Linear(dim, 3*dim, bias=False)) weights.
    c_attn_w = (jax.random.normal(kw, (3 * dimension, dimension), dtype=jnp.float32)
                * (1.0 / math.sqrt(dimension)))

    # Default module config: project=False (c_attn unused, q = k = v = x).
    out = multi_head_attention(x, n_head=n_head, project=False)
    out = jax.block_until_ready(out)
    ref = _reference(x, n_head=n_head, project=False)
    assert out.shape == (B, dimension, T)
    # Tolerance loosened vs. 1e-5 because of pl.reciprocal(approx=True).
    assert jnp.allclose(out, ref, atol=1e-2, rtol=1e-2), "project=False mismatch"

    # Fused projection path (c_attn matmul inside the kernel).
    out_p = multi_head_attention(x, c_attn_w, n_head=n_head, project=True)
    out_p = jax.block_until_ready(out_p)
    ref_p = _reference(x, c_attn_w, n_head=n_head, project=True)
    assert out_p.shape == (B, dimension, T)
    assert jnp.allclose(out_p, ref_p, atol=1e-2, rtol=1e-2), "project=True mismatch"

    print("KERNEL_OK")
</pallas_src>

<mosaic_0001>
module attributes {stable_mosaic.version = 11 : i64} {
  func.func @kernel(%arg0: i32, %arg1: memref<1x32x16xf32, #tpu.memory_space<vmem>>, %arg2: memref<1x16x32xf32, #tpu.memory_space<vmem>>) attributes {dimension_semantics = [#tpu.dimension_semantics<parallel>], iteration_bounds = array<i64: 2>, scalar_prefetch = 0 : i64, scratch_operands = 0 : i64, tpu.core_type = #tpu.core_type<tc>, window_params = [{transform_indices = @transform_0, window_bounds = array<i64: 1, 32, 16>}, {transform_indices = @transform_1, window_bounds = array<i64: 1, 16, 32>}]} {
    %c0 = arith.constant 0 : index
    %c0_0 = arith.constant 0 : index
    %c0_1 = arith.constant 0 : index
    %0 = vector.load %arg1[%c0, %c0_0, %c0_1] : memref<1x32x16xf32, #tpu.memory_space<vmem>>, vector<1x32x16xf32>
    %1 = vector.shape_cast %0 : vector<1x32x16xf32> to vector<32x16xf32>
    %2 = vector.extract_strided_slice %1 {offsets = [0, 0], sizes = [16, 16], strides = [1, 1]} : vector<32x16xf32> to vector<16x16xf32>
    %cst = arith.constant 2.500000e-01 : f32
    %3 = vector.broadcast %cst : f32 to vector<16x16xf32>
    %4 = arith.mulf %2, %3 : vector<16x16xf32>
    %cst_2 = arith.constant dense<0.000000e+00> : vector<16x16xf32>
    %5 = tpu.matmul %4, %2, %cst_2 {dimension_numbers = #tpu.dot_dimension_numbers<[0], [0], [1], [1], [0, 1, 1, 1], [], []>} : vector<16x16xf32>, vector<16x16xf32>, vector<16x16xf32> -> vector<16x16xf32>
    %cst_3 = arith.constant dense<0xFF800000> : vector<16xf32>
    %6 = vector.multi_reduction <maximumf>, %5, %cst_3 [1] : vector<16x16xf32> to vector<16xf32>
    %7 = vector.shape_cast %6 : vector<16xf32> to vector<16x1xf32>
    %8 = vector.broadcast %7 : vector<16x1xf32> to vector<16x16xf32>
    %9 = arith.subf %5, %8 : vector<16x16xf32>
    %10 = math.exp %9 : vector<16x16xf32>
    %cst_4 = arith.constant dense<0.000000e+00> : vector<16xf32>
    %11 = vector.multi_reduction <add>, %10, %cst_4 [1] : vector<16x16xf32> to vector<16xf32>
    %12 = vector.shape_cast %11 : vector<16xf32> to vector<16x1xf32>
    %13 = vector.extract_strided_slice %1 {offsets = [0, 0], sizes = [16, 16], strides = [1, 1]} : vector<32x16xf32> to vector<16x16xf32>
    %cst_5 = arith.constant dense<0.000000e+00> : vector<16x16xf32>
    %14 = tpu.matmul %10, %13, %cst_5 {dimension_numbers = #tpu.dot_dimension_numbers<[1], [1], [0], [0], [0, 0, 1, 0], [], []>} : vector<16x16xf32>, vector<16x16xf32>, vector<16x16xf32> -> vector<16x16xf32>
    %15 = tpu.reciprocal %12 {approx = true} : vector<16x1xf32> -> vector<16x1xf32>
    %16 = vector.broadcast %15 : vector<16x1xf32> to vector<16x16xf32>
    %17 = arith.mulf %14, %16 : vector<16x16xf32>
    %18 = vector.extract_strided_slice %1 {offsets = [16, 0], sizes = [16, 16], strides = [1, 1]} : vector<32x16xf32> to vector<16x16xf32>
    %cst_6 = arith.constant 2.500000e-01 : f32
    %19 = vector.broadcast %cst_6 : f32 to vector<16x16xf32>
    %20 = arith.mulf %18, %19 : vector<16x16xf32>
    %cst_7 = arith.constant dense<0.000000e+00> : vector<16x16xf32>
    %21 = tpu.matmul %20, %18, %cst_7 {dimension_numbers = #tpu.dot_dimension_numbers<[0], [0], [1], [1], [0, 1, 1, 1], [], []>} : vector<16x16xf32>, vector<16x16xf32>, vector<16x16xf32> -> vector<16x16xf32>
    %cst_8 = arith.constant dense<0xFF800000> : vector<16xf32>
    %22 = vector.multi_reduction <maximumf>, %21, %cst_8 [1] : vector<16x16xf32> to vector<16xf32>
    %23 = vector.shape_cast %22 : vector<16xf32> to vector<16x1xf32>
    %24 = vector.broadcast %23 : vector<16x1xf32> to vector<16x16xf32>
    %25 = arith.subf %21, %24 : vector<16x16xf32>
    %26 = math.exp %25 : vector<16x16xf32>
    %cst_9 = arith.constant dense<0.000000e+00> : vector<16xf32>
    %27 = vector.multi_reduction <add>, %26, %cst_9 [1] : vector<16x16xf32> to vector<16xf32>
    %28 = vector.shape_cast %27 : vector<16xf32> to vector<16x1xf32>
    %29 = vector.extract_strided_slice %1 {offsets = [16, 0], sizes = [16, 16], strides = [1, 1]} : vector<32x16xf32> to vector<16x16xf32>
    %cst_10 = arith.constant dense<0.000000e+00> : vector<16x16xf32>
    %30 = tpu.matmul %26, %29, %cst_10 {dimension_numbers = #tpu.dot_dimension_numbers<[1], [1], [0], [0], [0, 0, 1, 0], [], []>} : vector<16x16xf32>, vector<16x16xf32>, vector<16x16xf32> -> vector<16x16xf32>
    %31 = tpu.reciprocal %28 {approx = true} : vector<16x1xf32> -> vector<16x1xf32>
    %32 = vector.broadcast %31 : vector<16x1xf32> to vector<16x16xf32>
    %33 = arith.mulf %30, %32 : vector<16x16xf32>
    %34 = tpu.concatenate %17, %33 in 1 : vector<16x16xf32>, vector<16x16xf32> -> vector<16x32xf32>
    %c0_11 = arith.constant 0 : index
    %c0_12 = arith.constant 0 : index
    %c0_13 = arith.constant 0 : index
    %35 = vector.load %arg2[%c0_11, %c0_12, %c0_13] : memref<1x16x32xf32, #tpu.memory_space<vmem>>, vector<1x16x32xf32>
    %36 = vector.shape_cast %35 : vector<1x16x32xf32> to vector<16x32xf32>
    %37 = vector.shape_cast %34 : vector<16x32xf32> to vector<1x16x32xf32>
    tpu.vector_store %arg2[%c0_11, %c0_12, %c0_13], %37 {strides = array<i32>} : memref<1x16x32xf32, #tpu.memory_space<vmem>>, vector<1x16x32xf32>,
    return
  }
  func.func @transform_0(%arg0: i32) -> (i32, i32, i32) {
    %c0_i32 = arith.constant 0 : i32
    %c0_i32_0 = arith.constant 0 : i32
    %c0_i32_1 = arith.constant 0 : i32
    return %arg0, %c0_i32, %c0_i32_0 : i32, i32, i32
  }
  func.func @transform_1(%arg0: i32) -> (i32, i32, i32) {
    %c0_i32 = arith.constant 0 : i32
    %c0_i32_0 = arith.constant 0 : i32
    %c0_i32_1 = arith.constant 0 : i32
    return %arg0, %c0_i32, %c0_i32_0 : i32, i32, i32
  }
}

</mosaic_0001>

<bundles_post_ra>
// kernel: tpu_custom_call.1
= control target key start
LH: loop header
LB: loop body
LE: loop exit
PB: predicated region body
PF: predicated region fallthrough
CT: control target
= control target key end

     0   :  { %6 = vsyncpa [#allocation3], 0  ;;  %s722_s0 = inlined_call_operand.vmem [shape: f32[2,32,16], index: 0, kind: input, shape index: {}]   ;;  %s723_s1 = inlined_call_operand.hbm [shape: f32[2,16,32], index: 1, kind: output, shape index: {}]  }
   0x1   :  { %8 = vsyncpa [#allocation3 + $0x1], 0  ;;  %s613_s6 = smov 0   ;;  %s615_s7 = smov 0  }
   0x2   :  { %s617_s8 = smov 0   ;;  %s619_s9 = smov 0  }
   0x3 LB: > { %s634_s10 = sadd.s32 4294967295, %s598_s9   ;;  %s451_s11 = sadd.s32 4294967294, %s598_s9   ;;  %s598_s9 = sphi %s619_s9, %s729_s9   ;;  %s594_s8 = sphi %s617_s8, %s728_s8   ;;  %s590_s7 = sphi %s615_s7, %s727_s7   ;;  %s586_s6 = sphi %s613_s6, %s726_s6  }
   0x4   : > { %s638_s12 = sadd.s32 1, %s598_s9   ;;  %s47_s13 = sadd.s32 1, %s594_s8 }
   0x5   : > { %s44_s14 = ssub.s32 %s598_s9, %s638_s12  ;;  %p57_p0 = scmp.ne.s32.totalorder %s594_s8, %s590_s7 }
   0x6   : > { %p45_p1 = scmp.eq.s32.totalorder %s44_s14, 0  ;;  %p58_p2 = scmp.eq.s32.totalorder %s634_s10, 1 }
   0x7   : > { %p63_p3 = scmp.ne.s32.totalorder %s590_s7, %s586_s6  ;;  %p64_p4 = scmp.eq.s32.totalorder %s451_s11, 1 }
   0x8   : > { %s649_s15 = scalar_select %p45_p1, %s594_s8, %s47_s13  }
   0x9   : > { %p651_p5 = por %p58_p2, %p57_p0  ;;  %p655_p6 = por %p64_p4, %p63_p3 }
   0xa   : > { %p454_p7 = scmp.ge.s32.totalorder %s598_s9, 1  ;;  %p90_p8 = scmp.lt.s32.totalorder %s598_s9, 3 }
   0xc   : > { %p91_p9 = pnand %p454_p7, %p90_p8 }
   0xd   : > { %p110_p10 = scmp.lt.s32.totalorder (!%p91_p9), %s634_s10, 1  ;;  %s600_s23 = smov (!%p91_p9), 16  }
   0xe   : > { %94 = sbr.rel (%p91_p9) target bundleno = 691 (0x2b3), region = 24  ;;  %s107_s24 = sand.u32 (!%p91_p9), 1, %s590_s7  }
   0xf   : > { %s455_s25 = sshll.u32 (!%p91_p9), %s107_s24, 4  ;;  %s476_s26 = sshll.u32 (!%p91_p9), %s634_s10, 4 }
  0x10   : > { %s109_s27 = scalar_lea.vmem (!%p91_p9), [#allocation2], %s455_s25  ;;  %s385_s30 = scalar_lea.hbm (!%p91_p9), %s723_s1, %s476_s26 }
  0x11   : > { %s386_s2 = sshll.u32 (!%p91_p9), %s109_s27, 4  ;;  %s388_s3 = sshll.u32 (!%p91_p9), %s385_s30, 4  ;;  %s387_s2 = int_to_ptr.vmem [resolvable:$true] %s386_s2  ;;  %s389_s3 = int_to_ptr.hbm [resolvable:$true] %s388_s3 }
  0x12   : > { %s374_s4 = scalar_lea.sflag (!%p91_p9), [#allocation3], %s107_s24  ;;  %s550_s5 = sshra.s32 (!%p91_p9), %s389_s3, 4  ;;  %s551_s5 = int_to_ptr.hbm [resolvable:$true] %s550_s5 }
  0x13   : > { %s111_s18 = scalar_select %p110_p10, %s634_s10, 1  ;;  %vm153_vm0 = vcmask 130048   ;;  %vm370_vm1 = vcmask 261120  }
  0x14   : > { %s552_s10 = scalar_lea.hbm %s551_s5, 16  ;;  %s556_s14 = scalar_lea.hbm %s723_s1, 32 }
  0x15   : > { %s475_s19 = sshll.u32 %s111_s18, 5  ;;  %p553_p11 = scmp.ne.s32.totalorder %s551_s5, %s552_s10 }
  0x16   : > { %s114_s22 = scalar_lea.vmem %s722_s0, %s475_s19  ;;  %p557_p0 = scmp.lt.s32.totalorder %s551_s5, %s723_s1 }
  0x17   : > { %v117_v0 = vld [vmem:[%s114_s22 + $0x10] sm:$0xff]  ;;  %v115_v1 = vld [vmem:[%s114_s22] sm:$0xff]  ;;  %v118_v2 = vld [vmem:[%s114_s22 + $0x18] sm:$0xff]  ;;  %p554_p12 = pnand %p553_p11, %p651_p5  ;;  %p558_p1 = scmp.lt.s32.totalorder %s556_s14, %s552_s10 }
  0x18   : > { %v240_v3 = vmul.f32 0.25, %v117_v0  ;;  %v119_v4 = vmul.f32 0.25, %v115_v1  ;;  %v116_v5 = vld [vmem:[%s114_s22 + $0x8] sm:$0xff]  ;;  %294 = vmatpush.msra.mxu2 %v118_v2  ;;  %v241_v6 = vmul.f32 0.25, %v118_v2  ;;  %466 = vmatpush.xpose.msk.msra.mxu3 %vm153_vm0, %v118_v2 }
  0x19   : > { %174 = vmatpush.msra.mxu0 %v116_v5  ;;  %v120_v7 = vmul.f32 0.25, %v116_v5  ;;  %460 = vmatpush.xpose.msk.msra.mxu1 %vm153_vm0, %v116_v5  ;;  %p555_p13 = pneg %p554_p12  ;;  %p559_p2 = por %p558_p1, %p557_p0 }
  0x1a   : > { %242 = vxpose.xlu0.b32.start [1/2] (short) (narrow) %v240_v3, 16  ;;  %121 = vxpose.xlu1.b32.start [1/2] (short) (narrow) %v119_v4, 16 }
  0x1b   : > { %295 = vmatpush.msra.mxu2 %v117_v0  ;;  %175 = vmatpush.msra.mxu0 %v115_v1  ;;  %p560_p3 = pnand %p559_p2, %p555_p13 }
  0x1c   : > { %467 = vmatpush.xpose.msk.msra.mxu3 %vm153_vm0, %v117_v0 }
  0x1d   : > { %461 = vmatpush.xpose.msk.msra.mxu1 %vm153_vm0, %v115_v1 }
  0x22   : > { %243 = vxpose.xlu0.b32.end [2/2] (short) (narrow) %v241_v6, 16  ;;  %122 = vxpose.xlu1.b32.end [2/2] (short) (narrow) %v120_v7, 16 }
  0xbe   : > { %v258_v8 = vpop.trf.xlu0  ;;  %v137_v9 = vpop.trf.xlu1 }
  0xbf   : > { %458 = vmatmul.msk.f32.vlgmr.msra.gmra.mxu0 %vm153_vm0, %v137_v9  ;;  %464 = vmatmul.msk.f32.vlgmr.msra.gmra.mxu2 %vm153_vm0, %v258_v8 }
  0xc6   : > { %v259_v10 = vpop.trf.xlu0  ;;  %v138_v11 = vpop.trf.xlu1 }
  0xc7   : > { %459 = vmatmul.msk.f32.gmra.mxu0 %vm153_vm0, %v138_v11  ;;  %465 = vmatmul.msk.f32.gmra.mxu2 %vm153_vm0, %v259_v10 }
 0x13c   : > { %v177_v12 = vpop.f32.mrf.mxu0 }
 0x13d   : > { %v183_v13 = vsel %vm153_vm0, %v177_v12, -inf }
 0x13e   : > { %184 = vmax.xlane.f32.xlu0 %v183_v13 }
 0x142   : > { %v297_v14 = vpop.f32.mrf.mxu2 }
 0x143   : > { %v303_v15 = vsel %vm153_vm0, %v297_v14, -inf }
 0x144   : > { %304 = vmax.xlane.f32.xlu2 %v303_v15  ;;  %v180_v16 = vpop.f32.mrf.mxu0 }
 0x145   : > { %v186_v17 = vsel %vm153_vm0, %v180_v16, -inf }
 0x146   : > { %187 = vmax.xlane.f32.xlu1 %v186_v17 }
 0x14a   : > { %v300_v18 = vpop.f32.mrf.mxu2 }
 0x14b   : > { %v306_v19 = vsel %vm153_vm0, %v300_v18, -inf }
 0x14c   : > { %307 = vmax.xlane.f32.xlu2 %v306_v19 }
 0x1b1   : > { %v185_v20 = vpop.xlane.xlu0 %184 }
 0x1b2   : > { %v189_v21 = vsub.f32 %v177_v12, %v185_v20 }
 0x1b4   : > { %v191_v22 = vmul.f32 1.442695, %v189_v21 }
 0x1b6   : > { %520 = vpow2.f32 %v191_v22 }
 0x1b7   : > { %v305_v23 = vpop.xlane.xlu2 %304 }
 0x1b8   : > { %v309_v24 = vsub.f32 %v297_v14, %v305_v23 }
 0x1b9   : > { %v188_v25 = vpop.xlane.xlu1 %187 }
 0x1ba   : > { %v311_v26 = vmul.f32 1.442695, %v309_v24  ;;  %v190_v27 = vsub.f32 %v180_v16, %v188_v25 }
 0x1bc   : > { %v521_v28 = vpop.eup %520  ;;  %522 = vpow2.f32 %v311_v26  ;;  %v193_v29 = vmul.f32 1.442695, %v190_v27 }
 0x1bd   : > { %462 = vmatmul.msk.f32.vlgmr.msra.gmra.mxu1 %vm153_vm0, %v521_v28  ;;  %v195_v30 = vsel %vm153_vm0, %v521_v28, 0.0 }
 0x1be   : > { %524 = vpow2.f32 %v193_v29  ;;  %196 = vadd.xlane.f32.xlu2 %v195_v30 }
 0x1bf   : > { %v308_v31 = vpop.xlane.xlu2 %307 }
 0x1c0   : > { %v310_v32 = vsub.f32 %v300_v18, %v308_v31 }
 0x1c2   : > { %v523_v33 = vpop.eup %522  ;;  %v313_v34 = vmul.f32 1.442695, %v310_v32 }
 0x1c3   : > { %468 = vmatmul.msk.f32.vlgmr.msra.gmra.mxu3 %vm153_vm0, %v523_v33  ;;  %v315_v36 = vsel %vm153_vm0, %v523_v33, 0.0 }
 0x1c4   : > { %v525_v35 = vpop.eup %524  ;;  %526 = vpow2.f32 %v313_v34 }
 0x1c5   : > { %463 = vmatmul.msk.f32.gmra.mxu1 %vm153_vm0, %v525_v35  ;;  %v198_v38 = vsel %vm153_vm0, %v525_v35, 0.0 }
 0x1c6   : > { %316 = vadd.xlane.f32.xlu2 %v315_v36 }
 0x1ca   : > { %v527_v37 = vpop.eup %526 }
 0x1cb   : > { %469 = vmatmul.msk.f32.gmra.mxu3 %vm153_vm0, %v527_v37  ;;  %v318_v39 = vsel %vm153_vm0, %v527_v37, 0.0 }
 0x1ce   : > { %199 = vadd.xlane.f32.xlu2 %v198_v38 }
 0x1d6   : > { %319 = vadd.xlane.f32.xlu2 %v318_v39 }
 0x231   : > { %v197_v40 = vpop.xlane.xlu2 %196 }
 0x239   : > { %v317_v41 = vpop.xlane.xlu2 %316 }
 0x23a   : > { %528 = vrcp.f32 %v317_v41  ;;  %v230_v50 = vpop.f32.mrf.mxu1 }
 0x240   : > { %v529_v43 = vpop.eup %528 }
 0x241   : > { %v200_v42 = vpop.xlane.xlu2 %199 }
 0x242   : > { %v233_v56 = vpop.f32.mrf.mxu1 }
 0x246   : > { %v350_v44 = vpop.f32.mrf.mxu3 }
 0x247   : > { %v358_v45 = vmul.f32 %v529_v43, %v350_v44 }
 0x249   : > { %362 = vrot.lane.b32.xlu2 %v358_v45, %s600_s23  ;;  %v320_v46 = vpop.xlane.xlu2 %319 }
 0x24a   : > { %530 = vrcp.f32 %v320_v46 }
 0x24b   : > { %532 = vrcp.f32 %v197_v40 }
 0x24c   : > { %534 = vrcp.f32 %v200_v42 }
 0x24e   : > { %v353_v48 = vpop.f32.mrf.mxu3 }
 0x250   : > { %v531_v47 = vpop.eup %530 }
 0x251   : > { %v359_v49 = vmul.f32 %v531_v47, %v353_v48  ;;  %v533_v51 = vpop.eup %532 }
 0x252   : > { %v238_v52 = vmul.f32 %v533_v51, %v230_v50  ;;  %v535_v55 = vpop.eup %534 }
 0x253   : > { %364 = vrot.lane.b32.xlu2 %v359_v49, %s600_s23  ;;  %v239_v57 = vmul.f32 %v535_v55, %v233_v56 }
 0x2a3   : > { %v363_v53 = vpop.permute.xlu2 %362 }
 0x2a4   : > { %v368_v54 = vsel %vm153_vm0, %v238_v52, %v363_v53 }
 0x2a5   : > { %371 = vst.msk [vmem:[%s109_s27] sm:$0xff] %vm370_vm1, %v368_v54 }
 0x2ad   : > { %v365_v58 = vpop.permute.xlu2 %364 }
 0x2ae   : > { %v369_v59 = vsel %vm153_vm0, %v239_v57, %v365_v58 }
 0x2af   : > { %372 = vst.msk [vmem:[%s109_s27 + $0x8] sm:$0xff] %vm370_vm1, %v369_v59 }
 0x2b0   : > { %563 = shalt.err (!%p560_p3)
}
 0x2b1   : > { %s601_s20 = smov 128   ;;  %s602_s21 = smov 8  }
 0x2b2   : > { %477 = dma.vmem_to_hbm [thread:$0]  (%p651_p5), %s387_s2, 256, %s389_s3, %s374_s4, %s601_s20, %s601_s20, %s602_s21  }
 0x2b3 PF: > { %p483_p4 = scmp.ge.s32.totalorder %s598_s9, 2  ;;  %s403_s22 = sand.u32 1, %s586_s6  }
 0x2b4   : > { %s404_s23 = scalar_lea.sflag [#allocation3], %s403_s22 }
 0x2b5   : > { %p480_p7 = pnand %p483_p4, %p655_p6 }
 0x2b7   : > { %p481_p8 = pneg %p480_p7 }
 0x2b9   : > { %581 = dma.done.wait (%p481_p8), %s404_s23, 256  }
 0x2ba   : > { %583 = vsyncadd (%p481_p8), %s404_s23, 4294967040  ;;  %p11_p9 = scmp.ge.s32.totalorder %s638_s12, 4   ;;  %s726_s6 = smov %s590_s7 }
 0x2bb   : > { %s727_s7 = smov %s594_s8  ;;  %s728_s8 = smov %s649_s15 }
 0x2bc   : > { %s729_s9 = smov %s638_s12  ;;  %13 = sbr.rel (!%p11_p9) target bundleno = 3 (0x3), region = 59 }
 0x2c1   :  { %410 = vsyncpa [#allocation3], 1 }
 0x2c2   :  { %412 = vsyncpa [#allocation3 + $0x1], 1 }

</bundles_post_ra>
